<compile_context>
chip_gen: v6e
topology: v6e:2x2x1
jax: 0.10.0
libtpu: 0.0.40
codegen_flags: <defaults>
</compile_context>

<pallas_src>
import functools

import jax
import jax.numpy as jnp
from jax import lax
from jax.experimental import pallas as pl
from jax.experimental.pallas import tpu as pltpu


def _round_up(x, m):
    return ((x + m - 1) // m) * m


def _mlp_score_kernel(num_layers, out_channels, compute_dtype, *refs):
    # refs = (x_ref, w0, b0, w1, b1, ..., w_{L-1}, b_{L-1}, o_ref)
    x_ref = refs[0]
    o_ref = refs[-1]
    p = refs[1:-1]

    vpu_head = (out_channels == 1) and (num_layers >= 2)

    # Row-major (tile_m, F) f32 block straight from HBM; cast to the MXU
    # compute dtype in-kernel (cheap VPU pass, no extra HBM traffic).
    h = x_ref[...].astype(compute_dtype)
    row_major = True

    # "NT" contraction: contract the last (feature) dim of both operands,
    # i.e. W @ h^T.  The very first matmul already produces a feature-major
    # (fan_out, tile_m) activation, so no standalone transpose is needed.
    nt_dims = (((1,), (1,)), ((), ()))

    # Hidden layers: Linear -> ReLU.
    # TODO(synk): dropout with p > 0 in training mode is not implemented
    # (module default p=0 / eval mode -> identity).
    for layer in range(num_layers - 1):
        w = p[2 * layer][...]                       # (fan_out, fan_in) bf16
        b = p[2 * layer + 1][...]                   # (fan_out, 1) f32
        if row_major:
            z = lax.dot_general(w, h, nt_dims,
                                preferred_element_type=jnp.float32)
            row_major = False
        else:
            z = jnp.dot(w, h, preferred_element_type=jnp.float32)
        z = jnp.maximum(z + b, 0.0)                 # (fan_out, tile_m) f32
        last_hidden = layer == num_layers - 2
        # The last hidden activation feeding the VPU head stays f32 (no MXU
        # pass there): saves two cast passes and a little precision.
        h = z if (last_hidden and vpu_head) else z.astype(compute_dtype)

    w = p[-2][...]
    b = p[-1][...]
    if vpu_head:
        # (fan_in, 1) f32 column weight: VPU multiply + sublane (XLU) reduce
        # -> lane-dense (1, tile_m) result, unmasked full-lane stores.
        z = jnp.sum(h * w, axis=0, keepdims=True) + b
    elif row_major:
        # num_layers == 1: head applied directly to the row-major input.
        z = lax.dot_general(w, h, nt_dims,
                            preferred_element_type=jnp.float32) + b
    else:
        z = jnp.dot(w, h, preferred_element_type=jnp.float32) + b
    o_ref[...] = jax.nn.sigmoid(z).astype(o_ref.dtype)


def mlp_score_pallas(x, weights, biases, *, tile_m=2048,
                     compute_dtype=jnp.bfloat16):
    """Fused MLP score: (Linear -> ReLU)* -> Linear -> sigmoid -> squeeze(-1).

    x:       [N, in_channels] float32 (consumed row-major, no pre-pass)
    weights: list of [fan_in, fan_out] arrays
    biases:  list of [fan_out] arrays
    """
    num_layers = len(weights)
    N, F = x.shape
    out_channels = weights[-1].shape[1]

    assert tile_m % 128 == 0, "tile_m must be a multiple of 128 (lane width)"
    # Shrink the tile for small problems so the single block isn't mostly pad.
    tile_m = min(tile_m, _round_up(N, 128))
    grid = (pl.cdiv(N, tile_m),)
    # NOTE: on v7x (2 TCs/chip) keep cdiv(N, tile_m) >= 2 (ideally even) for
    # large N; the row axis is "parallel" and shards across the cores.

    vpu_head = (out_channels == 1) and (num_layers >= 2)

    # Kernel-side parameter layout:
    #   * hidden layers / matmul head: W as (fan_out, fan_in) bf16 (PyTorch's
    #     natural layout), bias as (fan_out, 1) f32 column.
    #   * out_channels==1 head (num_layers>=2): W stays a (fan_in, 1) f32
    #     column (VPU/XLU path), bias (1, 1) f32.
    params = []
    for layer, (w, b) in enumerate(zip(weights, biases)):
        is_head = layer == num_layers - 1
        if is_head and vpu_head:
            params.append(jnp.asarray(w).astype(jnp.float32))        # (fan_in, 1)
            params.append(jnp.asarray(b).reshape(1, 1).astype(jnp.float32))
        else:
            params.append(jnp.asarray(w).T.astype(compute_dtype))    # (fan_out, fan_in)
            params.append(jnp.asarray(b).reshape(-1, 1).astype(jnp.float32))

    in_specs = [pl.BlockSpec((tile_m, F), lambda i: (i, 0))]
    for prm in params:
        # Full-extent constant-index blocks: stay VMEM-resident across grid.
        in_specs.append(pl.BlockSpec(prm.shape, lambda i: (0, 0)))

    out_spec = pl.BlockSpec((out_channels, tile_m), lambda i: (0, i))

    flops = 2 * N * sum(int(w.shape[0]) * int(w.shape[1]) for w in weights)
    bytes_accessed = (
        int(x.size) * x.dtype.itemsize
        + sum(int(prm.size) * prm.dtype.itemsize for prm in params)
        + N * out_channels * 4)
    cost = pl.CostEstimate(flops=flops,
                           transcendentals=N * out_channels,
                           bytes_accessed=bytes_accessed)

    kernel = functools.partial(_mlp_score_kernel, num_layers, out_channels,
                               compute_dtype)

    out = pl.pallas_call(
        kernel,
        out_shape=jax.ShapeDtypeStruct((out_channels, N), jnp.float32),
        grid_spec=pl.GridSpec(grid=grid, in_specs=in_specs,
                              out_specs=out_spec),
        compiler_params=pltpu.CompilerParams(
            dimension_semantics=("parallel",)),
        cost_estimate=cost,
    )(x, *params)

    if out_channels == 1:
        return out[0]            # (N,) — torch .squeeze(-1)
    return out.T                 # (N, out_channels)


def init_mlp_params(key, in_channels, hidden_channels, out_channels,
                    num_layers):
    """PyTorch-Linear-style init: U(-1/sqrt(fan_in), 1/sqrt(fan_in))."""
    if num_layers == 1:
        dims = [(in_channels, out_channels)]
    else:
        dims = [(in_channels, hidden_channels)]
        dims += [(hidden_channels, hidden_channels)] * (num_layers - 2)
        dims += [(hidden_channels, out_channels)]
    weights, biases = [], []
    for fan_in, fan_out in dims:
        key, kw, kb = jax.random.split(key, 3)
        bound = 1.0 / float(fan_in) ** 0.5
        weights.append(jax.random.uniform(kw, (fan_in, fan_out), jnp.float32,
                                          minval=-bound, maxval=bound))
        biases.append(jax.random.uniform(kb, (fan_out,), jnp.float32,
                                         minval=-bound, maxval=bound))
    return weights, biases


def mlp_score_ref(x, weights, biases, compute_dtype=jnp.bfloat16):
    """Pure-JAX reference mirroring the kernel arithmetic (bf16 matmul
    operands, f32 accumulation, f32 head when out_channels==1)."""
    n = len(weights)
    out_channels = weights[-1].shape[1]
    vpu_head = (out_channels == 1) and (n >= 2)
    h = x.astype(compute_dtype)
    for i, (w, b) in enumerate(zip(weights[:-1], biases[:-1])):
        z = jnp.dot(h, w.astype(compute_dtype),
                    preferred_element_type=jnp.float32) + b
        z = jnp.maximum(z, 0.0)
        last_hidden = i == n - 2
        h = z if (last_hidden and vpu_head) else z.astype(compute_dtype)
    if vpu_head:
        z = h @ weights[-1] + biases[-1]                       # pure f32 head
    else:
        z = jnp.dot(h.astype(compute_dtype),
                    weights[-1].astype(compute_dtype),
                    preferred_element_type=jnp.float32) + biases[-1]
    out = jax.nn.sigmoid(z)
    if out_channels == 1:
        out = out[..., 0]
    return out


def mlp_score_ref_f32(x, weights, biases):
    """Pure f32 reference matching the PyTorch module exactly."""
    h = x
    for w, b in zip(weights[:-1], biases[:-1]):
        h = jnp.maximum(h @ w + b, 0.0)
    z = h @ weights[-1] + biases[-1]
    out = jax.nn.sigmoid(z)
    if out.shape[-1] == 1:
        out = out[..., 0]
    return out


if __name__ == "__main__":
    # Small shapes consistent with the module: N rows of features.
    N = 700                   # not a multiple of tile_m -> partial last block
    in_channels = 32
    hidden_channels = 32
    out_channels = 1
    num_layers = 3

    key = jax.random.PRNGKey(0)
    key, kx = jax.random.split(key)
    x = jax.random.normal(kx, (N, in_channels), jnp.float32)

    weights, biases = init_mlp_params(key, in_channels, hidden_channels,
                                      out_channels, num_layers)

    # Default tile (shrinks to 768 here -> grid=(1,), partial block of 700 rows).
    out = jax.block_until_ready(mlp_score_pallas(x, weights, biases))
    # Multi-step grid with a partial last block (tile_m=256 -> grid=(3,)).
    out_small = jax.block_until_ready(
        mlp_score_pallas(x, weights, biases, tile_m=256))

    ref = mlp_score_ref(x, weights, biases)
    ref32 = mlp_score_ref_f32(x, weights, biases)
    assert out.shape == ref.shape == (N,), (out.shape, ref.shape)
    assert jnp.allclose(out, ref, atol=2e-3, rtol=2e-3), \
        float(jnp.max(jnp.abs(out - ref)))
    assert jnp.allclose(out, ref32, atol=3e-2, rtol=3e-2), \
        float(jnp.max(jnp.abs(out - ref32)))
    assert jnp.allclose(out_small, out, atol=1e-6, rtol=1e-6), \
        float(jnp.max(jnp.abs(out_small - out)))

    print("KERNEL_OK")
</pallas_src>

<mosaic_0001>
module attributes {stable_mosaic.version = 11 : i64} {
  func.func @_mlp_score_kernel(%arg0: i32, %arg1: memref<768x32xf32, #tpu.memory_space<vmem>>, %arg2: memref<32x32xbf16, #tpu.memory_space<vmem>>, %arg3: memref<32x1xf32, #tpu.memory_space<vmem>>, %arg4: memref<32x32xbf16, #tpu.memory_space<vmem>>, %arg5: memref<32x1xf32, #tpu.memory_space<vmem>>, %arg6: memref<32x1xf32, #tpu.memory_space<vmem>>, %arg7: memref<1x1xf32, #tpu.memory_space<vmem>>, %arg8: memref<1x768xf32, #tpu.memory_space<vmem>>) attributes {dimension_semantics = [#tpu.dimension_semantics<parallel>], iteration_bounds = array<i64: 1>, scalar_prefetch = 0 : i64, scratch_operands = 0 : i64, tpu.core_type = #tpu.core_type<tc>, window_params = [{transform_indices = @transform_0, window_bounds = array<i64: 768, 32>}, {pipeline_mode = #tpu.pipeline_mode<synchronous>, transform_indices = @transform_1, window_bounds = array<i64: 32, 32>}, {pipeline_mode = #tpu.pipeline_mode<synchronous>, transform_indices = @transform_2, window_bounds = array<i64: 32, 1>}, {pipeline_mode = #tpu.pipeline_mode<synchronous>, transform_indices = @transform_3, window_bounds = array<i64: 32, 32>}, {pipeline_mode = #tpu.pipeline_mode<synchronous>, transform_indices = @transform_4, window_bounds = array<i64: 32, 1>}, {pipeline_mode = #tpu.pipeline_mode<synchronous>, transform_indices = @transform_5, window_bounds = array<i64: 32, 1>}, {pipeline_mode = #tpu.pipeline_mode<synchronous>, transform_indices = @transform_6, window_bounds = array<i64: 1, 1>}, {transform_indices = @transform_7, window_bounds = array<i64: 1, 768>}]} {
    %c0 = arith.constant 0 : index
    %c0_0 = arith.constant 0 : index
    %0 = vector.load %arg1[%c0, %c0_0] : memref<768x32xf32, #tpu.memory_space<vmem>>, vector<768x32xf32>
    %1 = arith.truncf %0 : vector<768x32xf32> to vector<768x32xbf16>
    %c0_1 = arith.constant 0 : index
    %c0_2 = arith.constant 0 : index
    %2 = vector.load %arg2[%c0_1, %c0_2] : memref<32x32xbf16, #tpu.memory_space<vmem>>, vector<32x32xbf16>
    %c0_3 = arith.constant 0 : index
    %c0_4 = arith.constant 0 : index
    %3 = vector.load %arg3[%c0_3, %c0_4] : memref<32x1xf32, #tpu.memory_space<vmem>>, vector<32x1xf32>
    %cst = arith.constant dense<0.000000e+00> : vector<32x768xf32>
    %4 = tpu.matmul %2, %1, %cst {dimension_numbers = #tpu.dot_dimension_numbers<[1], [1], [0], [0], [0, 0, 1, 0], [], []>} : vector<32x32xbf16>, vector<768x32xbf16>, vector<32x768xf32> -> vector<32x768xf32>
    %5 = vector.broadcast %3 : vector<32x1xf32> to vector<32x768xf32>
    %6 = arith.addf %4, %5 : vector<32x768xf32>
    %cst_5 = arith.constant 0.000000e+00 : f32
    %7 = vector.broadcast %cst_5 : f32 to vector<32x768xf32>
    %8 = arith.maximumf %6, %7 : vector<32x768xf32>
    %9 = arith.truncf %8 : vector<32x768xf32> to vector<32x768xbf16>
    %c0_6 = arith.constant 0 : index
    %c0_7 = arith.constant 0 : index
    %10 = vector.load %arg4[%c0_6, %c0_7] : memref<32x32xbf16, #tpu.memory_space<vmem>>, vector<32x32xbf16>
    %c0_8 = arith.constant 0 : index
    %c0_9 = arith.constant 0 : index
    %11 = vector.load %arg5[%c0_8, %c0_9] : memref<32x1xf32, #tpu.memory_space<vmem>>, vector<32x1xf32>
    %cst_10 = arith.constant dense<0.000000e+00> : vector<32x768xf32>
    %12 = tpu.matmul %10, %9, %cst_10 {dimension_numbers = #tpu.dot_dimension_numbers<[1], [0], [0], [1], [0, 0, 1, 1], [], []>} : vector<32x32xbf16>, vector<32x768xbf16>, vector<32x768xf32> -> vector<32x768xf32>
    %13 = vector.broadcast %11 : vector<32x1xf32> to vector<32x768xf32>
    %14 = arith.addf %12, %13 : vector<32x768xf32>
    %cst_11 = arith.constant 0.000000e+00 : f32
    %15 = vector.broadcast %cst_11 : f32 to vector<32x768xf32>
    %16 = arith.maximumf %14, %15 : vector<32x768xf32>
    %c0_12 = arith.constant 0 : index
    %c0_13 = arith.constant 0 : index
    %17 = vector.load %arg6[%c0_12, %c0_13] : memref<32x1xf32, #tpu.memory_space<vmem>>, vector<32x1xf32>
    %c0_14 = arith.constant 0 : index
    %c0_15 = arith.constant 0 : index
    %18 = vector.load %arg7[%c0_14, %c0_15] : memref<1x1xf32, #tpu.memory_space<vmem>>, vector<1x1xf32>
    %19 = vector.broadcast %17 : vector<32x1xf32> to vector<32x768xf32>
    %20 = arith.mulf %16, %19 : vector<32x768xf32>
    %cst_16 = arith.constant dense<0.000000e+00> : vector<768xf32>
    %21 = vector.multi_reduction <add>, %20, %cst_16 [0] : vector<32x768xf32> to vector<768xf32>
    %22 = vector.shape_cast %21 : vector<768xf32> to vector<1x768xf32>
    %23 = vector.broadcast %18 : vector<1x1xf32> to vector<1x768xf32>
    %24 = arith.addf %22, %23 : vector<1x768xf32>
    %25 = arith.negf %24 : vector<1x768xf32>
    %26 = math.exp %25 : vector<1x768xf32>
    %cst_17 = arith.constant 1.000000e+00 : f32
    %27 = vector.broadcast %cst_17 : f32 to vector<1x768xf32>
    %28 = arith.addf %27, %26 : vector<1x768xf32>
    %29 = arith.divf %27, %28 : vector<1x768xf32>
    %c0_18 = arith.constant 0 : index
    %c0_19 = arith.constant 0 : index
    %30 = vector.load %arg8[%c0_18, %c0_19] : memref<1x768xf32, #tpu.memory_space<vmem>>, vector<1x768xf32>
    tpu.vector_store %arg8[%c0_18, %c0_19], %29 {strides = array<i32>} : memref<1x768xf32, #tpu.memory_space<vmem>>, vector<1x768xf32>,
    return
  }
  func.func @transform_0(%arg0: i32) -> (i32, i32) {
    %c0_i32 = arith.constant 0 : i32
    %c0_i32_0 = arith.constant 0 : i32
    return %arg0, %c0_i32 : i32, i32
  }
  func.func @transform_1(%arg0: i32) -> (i32, i32) {
    %c0_i32 = arith.constant 0 : i32
    %c0_i32_0 = arith.constant 0 : i32
    %c0_i32_1 = arith.constant 0 : i32
    return %c0_i32, %c0_i32_0 : i32, i32
  }
  func.func @transform_2(%arg0: i32) -> (i32, i32) {
    %c0_i32 = arith.constant 0 : i32
    %c0_i32_0 = arith.constant 0 : i32
    %c0_i32_1 = arith.constant 0 : i32
    return %c0_i32, %c0_i32_0 : i32, i32
  }
  func.func @transform_3(%arg0: i32) -> (i32, i32) {
    %c0_i32 = arith.constant 0 : i32
    %c0_i32_0 = arith.constant 0 : i32
    %c0_i32_1 = arith.constant 0 : i32
    return %c0_i32, %c0_i32_0 : i32, i32
  }
  func.func @transform_4(%arg0: i32) -> (i32, i32) {
    %c0_i32 = arith.constant 0 : i32
    %c0_i32_0 = arith.constant 0 : i32
    %c0_i32_1 = arith.constant 0 : i32
    return %c0_i32, %c0_i32_0 : i32, i32
  }
  func.func @transform_5(%arg0: i32) -> (i32, i32) {
    %c0_i32 = arith.constant 0 : i32
    %c0_i32_0 = arith.constant 0 : i32
    %c0_i32_1 = arith.constant 0 : i32
    return %c0_i32, %c0_i32_0 : i32, i32
  }
  func.func @transform_6(%arg0: i32) -> (i32, i32) {
    %c0_i32 = arith.constant 0 : i32
    %c0_i32_0 = arith.constant 0 : i32
    %c0_i32_1 = arith.constant 0 : i32
    return %c0_i32, %c0_i32_0 : i32, i32
  }
  func.func @transform_7(%arg0: i32) -> (i32, i32) {
    %c0_i32 = arith.constant 0 : i32
    %c0_i32_0 = arith.constant 0 : i32
    return %c0_i32, %arg0 : i32, i32
  }
}

</mosaic_0001>

<bundles_post_ra>
// kernel: tpu_custom_call.1
= control target key start
LH: loop header
LB: loop body
LE: loop exit
PB: predicated region body
PF: predicated region fallthrough
CT: control target
= control target key end

     0   :  { %s1743_s0 = inlined_call_operand.vmem [shape: f32[700,32], index: 0, kind: input, shape index: {}]   ;;  %s1744_s1 = inlined_call_operand.vmem [shape: bf16[32,32], index: 1, kind: input, shape index: {}]   ;;  %s1745_s2 = inlined_call_operand.vmem [shape: f32[32,1], index: 2, kind: input, shape index: {}]   ;;  %s1746_s3 = inlined_call_operand.vmem [shape: bf16[32,32], index: 3, kind: input, shape index: {}]   ;;  %s1747_s4 = inlined_call_operand.vmem [shape: f32[32,1], index: 4, kind: input, shape index: {}]   ;;  %s1748_s5 = inlined_call_operand.vmem [shape: f32[32,1], index: 5, kind: input, shape index: {}]   ;;  %s1749_s6 = inlined_call_operand.<no memory space> [shape: f32[1,1], index: 6, kind: input, shape index: {}]   ;;  %s1750_s7 = inlined_call_operand.hbm [shape: f32[1,700], index: 7, kind: output, shape index: {}]  }
   0x1   :  { %v12_v0 = vstv %s1749_s6 }
   0x2   :  { %13 = vst [vmem:[#allocation2] sm:$0x1] %v12_v0 }
   0x3   :  { %v60_v1 = vld [vmem:[%s1743_s0 + $0xf0] sm:$0xff]  ;;  %v61_v2 = vld [vmem:[%s1743_s0 + $0xf8] sm:$0xff]  ;;  %vm212_vm0 = vcmask 261120   ;;  %v58_v6 = vld [vmem:[%s1743_s0 + $0xe0] sm:$0xff]  ;;  %v1166_v18 = vmov 0  }
   0x4   :  { %v44_v3 = vld [vmem:[%s1743_s0 + $0x70] sm:$0xff]  ;;  %v141_v4 = vpack.c.bf16 %v61_v2, %v60_v1  ;;  %v45_v5 = vld [vmem:[%s1743_s0 + $0x78] sm:$0xff]  ;;  %v59_v7 = vld [vmem:[%s1743_s0 + $0xe8] sm:$0xff]  ;;  %1115 = vset.pattern.permute.xlu1 %v1166_v18  ;;  %1114 = vset.pattern.permute.xlu0 %v1166_v18 }
   0x5   :  { %v133_v8 = vpack.c.bf16 %v45_v5, %v44_v3  ;;  %v140_v9 = vpack.c.bf16 %v59_v7, %v58_v6  ;;  %v42_v10 = vld [vmem:[%s1743_s0 + $0x60] sm:$0xff]  ;;  %v43_v11 = vld [vmem:[%s1743_s0 + $0x68] sm:$0xff]  ;;  %v92_v12 = vld [vmem:[%s1743_s0 + $0x1f0] sm:$0xff] }
   0x6   :  { %1087 = vmatprep.subr.msk.bf16.mxu0 %vm212_vm0, %v141_v4  ;;  %v93_v13 = vld [vmem:[%s1743_s0 + $0x1f8] sm:$0xff]  ;;  %v76_v16 = vld [vmem:[%s1743_s0 + $0x170] sm:$0xff]  ;;  %v132_v19 = vpack.c.bf16 %v43_v11, %v42_v10  ;;  %v90_v22 = vld [vmem:[%s1743_s0 + $0x1e0] sm:$0xff] }
   0x7   :  { %v241_v14 = vsel %vm212_vm0, %v133_v8, 0  ;;  %v157_v15 = vpack.c.bf16 %v93_v13, %v92_v12  ;;  %v77_v17 = vld [vmem:[%s1743_s0 + $0x178] sm:$0xff]  ;;  %v56_v20 = vld [vmem:[%s1743_s0 + $0xd0] sm:$0xff]  ;;  %v91_v23 = vld [vmem:[%s1743_s0 + $0x1e8] sm:$0xff] }
   0x8   :  { %1028 = vmatpush3.bf16.xpose.msra.mxu0 %v241_v14  ;;  %v149_v21 = vpack.c.bf16 %v77_v17, %v76_v16  ;;  %v57_v24 = vld [vmem:[%s1743_s0 + $0xd8] sm:$0xff]  ;;  %v156_v25 = vpack.c.bf16 %v91_v23, %v90_v22  ;;  %v74_v26 = vld [vmem:[%s1743_s0 + $0x160] sm:$0xff]  ;;  %v75_v27 = vld [vmem:[%s1743_s0 + $0x168] sm:$0xff]  ;;  %v238_v29 = vsel %vm212_vm0, %v132_v19, 0 }
   0x9   :  { %1088 = vmatprep.subr.msk.bf16.mxu0 %vm212_vm0, %v140_v9  ;;  %1095 = vmatprep.subr.msk.bf16.mxu1 %vm212_vm0, %v157_v15  ;;  %v139_v30 = vpack.c.bf16 %v57_v24, %v56_v20  ;;  %v40_v31 = vld [vmem:[%s1743_s0 + $0x50] sm:$0xff]  ;;  %v148_v32 = vpack.c.bf16 %v75_v27, %v74_v26  ;;  %v41_v33 = vld [vmem:[%s1743_s0 + $0x58] sm:$0xff]  ;;  %v54_v37 = vld [vmem:[%s1743_s0 + $0xc0] sm:$0xff] }
   0xa   :  { %v289_v28 = vsel %vm212_vm0, %v149_v21, 0  ;;  %v88_v34 = vld [vmem:[%s1743_s0 + $0x1d0] sm:$0xff]  ;;  %v89_v35 = vld [vmem:[%s1743_s0 + $0x1d8] sm:$0xff]  ;;  %v131_v36 = vpack.c.bf16 %v41_v33, %v40_v31  ;;  %v55_v40 = vld [vmem:[%s1743_s0 + $0xc8] sm:$0xff] }
   0xb   :  { %1048 = vmatpush3.bf16.xpose.msra.mxu1 %v289_v28  ;;  %v286_v38 = vsel %vm212_vm0, %v148_v32, 0  ;;  %v155_v39 = vpack.c.bf16 %v89_v35, %v88_v34  ;;  %v72_v41 = vld [vmem:[%s1743_s0 + $0x150] sm:$0xff]  ;;  %v73_v42 = vld [vmem:[%s1743_s0 + $0x158] sm:$0xff]  ;;  %v38_v43 = vld [vmem:[%s1743_s0 + $0x40] sm:$0xff]  ;;  %v138_v45 = vpack.c.bf16 %v55_v40, %v54_v37 }
   0xc   :  { %1096 = vmatprep.subr.msk.bf16.mxu1 %vm212_vm0, %v156_v25  ;;  %v235_v44 = vsel %vm212_vm0, %v131_v36, 0  ;;  %v39_v46 = vld [vmem:[%s1743_s0 + $0x48] sm:$0xff]  ;;  %v147_v47 = vpack.c.bf16 %v73_v42, %v72_v41  ;;  %v86_v48 = vld [vmem:[%s1743_s0 + $0x1c0] sm:$0xff]  ;;  %v52_v52 = vld [vmem:[%s1743_s0 + $0xb0] sm:$0xff] }
   0xd   :  { %v87_v49 = vld [vmem:[%s1743_s0 + $0x1c8] sm:$0xff]  ;;  %v1318_v50 = vld [vmem:[%s1744_s1] sm:$0xff]   ;;  %v130_v51 = vpack.c.bf16 %v39_v46, %v38_v43  ;;  %v53_v55 = vld [vmem:[%s1743_s0 + $0xb8] sm:$0xff] }
   0xe   :  { %1043 = vmatprep.mubr.msk.bf16.mxu0 %vm212_vm0, %v1318_v50  ;;  %v283_v53 = vsel %vm212_vm0, %v147_v47, 0  ;;  %v154_v54 = vpack.c.bf16 %v87_v49, %v86_v48  ;;  %1063 = vmatprep.mubr.msk.bf16.mxu1 %vm212_vm0, %v1318_v50  ;;  %v70_v56 = vld [vmem:[%s1743_s0 + $0x140] sm:$0xff]  ;;  %v71_v57 = vld [vmem:[%s1743_s0 + $0x148] sm:$0xff]  ;;  %v137_v59 = vpack.c.bf16 %v53_v55, %v52_v52  ;;  %v36_v60 = vld [vmem:[%s1743_s0 + $0x30] sm:$0xff] }
   0xf   :  { %v232_v58 = vsel %vm212_vm0, %v130_v51, 0  ;;  %v146_v61 = vpack.c.bf16 %v71_v57, %v70_v56  ;;  %v37_v62 = vld [vmem:[%s1743_s0 + $0x38] sm:$0xff]  ;;  %v84_v63 = vld [vmem:[%s1743_s0 + $0x1b0] sm:$0xff]  ;;  %v50_v2 = vld [vmem:[%s1743_s0 + $0xa0] sm:$0xff] }
  0x10   :  { %1030 = vmatpush3.bf16.xpose.msra.mxu0 %v238_v29  ;;  %v85_v0 = vld [vmem:[%s1743_s0 + $0x1b8] sm:$0xff]  ;;  %v129_v1 = vpack.c.bf16 %v37_v62, %v36_v60  ;;  %v51_v5 = vld [vmem:[%s1743_s0 + $0xa8] sm:$0xff]  ;;  %v68_v6 = vld [vmem:[%s1743_s0 + $0x130] sm:$0xff] }
  0x11   :  { %1089 = vmatprep.subr.msk.bf16.mxu0 %vm212_vm0, %v139_v30  ;;  %v280_v3 = vsel %vm212_vm0, %v146_v61, 0  ;;  %v153_v4 = vpack.c.bf16 %v85_v0, %v84_v63  ;;  %v69_v7 = vld [vmem:[%s1743_s0 + $0x138] sm:$0xff]  ;;  %v136_v9 = vpack.c.bf16 %v51_v5, %v50_v2  ;;  %v34_v10 = vld [vmem:[%s1743_s0 + $0x20] sm:$0xff]  ;;  %v180_v13 = vld [vmem:[%s1745_s2 + $0x10] sm:$0xff] }
  0x12   :  { %v229_v8 = vsel %vm212_vm0, %v129_v1, 0  ;;  %v145_v11 = vpack.c.bf16 %v69_v7, %v68_v6  ;;  %v178_v12 = vld [vmem:[%s1745_s2] sm:$0xff]  ;;  %v35_v14 = vld [vmem:[%s1743_s0 + $0x28] sm:$0xff]  ;;  %194 = vperm.xlu0 %1114, %v180_v13   ;;  %v181_v19 = vld [vmem:[%s1745_s2 + $0x18] sm:$0xff] }
  0x13   :  { %1050 = vmatpush3.bf16.xpose.msra.mxu1 %v286_v38  ;;  %v82_v15 = vld [vmem:[%s1743_s0 + $0x1a0] sm:$0xff]  ;;  %v83_v16 = vld [vmem:[%s1743_s0 + $0x1a8] sm:$0xff]  ;;  %184 = vperm.xlu1 %1115, %v178_v12   ;;  %v48_v20 = vld [vmem:[%s1743_s0 + $0x90] sm:$0xff]  ;;  %v128_v23 = vpack.c.bf16 %v35_v14, %v34_v10 }
  0x14   :  { %1097 = vmatprep.subr.msk.bf16.mxu1 %vm212_vm0, %v155_v39  ;;  %v179_v17 = vld [vmem:[%s1745_s2 + $0x8] sm:$0xff]  ;;  %v49_v21 = vld [vmem:[%s1743_s0 + $0x98] sm:$0xff]  ;;  %v66_v22 = vld [vmem:[%s1743_s0 + $0x120] sm:$0xff]  ;;  %v277_v24 = vsel %vm212_vm0, %v145_v11, 0  ;;  %v152_v25 = vpack.c.bf16 %v83_v16, %v82_v15 }
  0x15   :  { %v67_v26 = vld [vmem:[%s1743_s0 + $0x128] sm:$0xff] }
  0x16   :  { %199 = vperm.xlu0 %1114, %v181_v19  }
  0x17   :  { %189 = vperm.xlu1 %1115, %v179_v17  }
  0x18   :  { %1032 = vmatpush3.bf16.xpose.msra.mxu0 %v235_v44 }
  0x19   :  { %1090 = vmatprep.subr.msk.bf16.mxu0 %vm212_vm0, %v138_v45 }
  0x1b   :  { %1052 = vmatpush3.bf16.xpose.msra.mxu1 %v283_v53 }
  0x1c   :  { %1098 = vmatprep.subr.msk.bf16.mxu1 %vm212_vm0, %v154_v54 }
  0x20   :  { %1034 = vmatpush3.bf16.xpose.msra.mxu0 %v232_v58 }
  0x21   :  { %1091 = vmatprep.subr.msk.bf16.mxu0 %vm212_vm0, %v137_v59 }
  0x23   :  { %1054 = vmatpush3.bf16.xpose.msra.mxu1 %v280_v3 }
  0x24   :  { %1099 = vmatprep.subr.msk.bf16.mxu1 %vm212_vm0, %v153_v4 }
  0x28   :  { %1036 = vmatpush3.bf16.xpose.msra.mxu0 %v229_v8 }
  0x29   :  { %1092 = vmatprep.subr.msk.bf16.mxu0 %vm212_vm0, %v136_v9 }
  0x2a   :  { %14 = vsyncpa [#allocation4], 0  ;;  %v562_v27 = vld [vmem:[%s1747_s4] sm:$0xff]  ;;  %v563_v28 = vld [vmem:[%s1747_s4 + $0x8] sm:$0xff]  ;;  %v226_v29 = vsel %vm212_vm0, %v128_v23, 0  ;;  %v135_v30 = vpack.c.bf16 %v49_v21, %v48_v20  ;;  %v144_v32 = vpack.c.bf16 %v67_v26, %v66_v22 }
  0x2b   :  { %1056 = vmatpush3.bf16.xpose.msra.mxu1 %v277_v24  ;;  %v32_v31 = vld [vmem:[%s1743_s0 + $0x10] sm:$0xff]  ;;  %v33_v33 = vld [vmem:[%s1743_s0 + $0x18] sm:$0xff]  ;;  %568 = vperm.xlu0 %1114, %v562_v27   ;;  %v46_v39 = vld [vmem:[%s1743_s0 + $0x80] sm:$0xff] }
  0x2c   :  { %1100 = vmatprep.subr.msk.bf16.mxu1 %vm212_vm0, %v152_v25  ;;  %v80_v34 = vld [vmem:[%s1743_s0 + $0x190] sm:$0xff]  ;;  %v81_v35 = vld [vmem:[%s1743_s0 + $0x198] sm:$0xff]  ;;  %573 = vperm.xlu1 %1115, %v563_v28   ;;  %v127_v38 = vpack.c.bf16 %v33_v33, %v32_v31  ;;  %v274_v40 = vsel %vm212_vm0, %v144_v32, 0  ;;  %v47_v42 = vld [vmem:[%s1743_s0 + $0x88] sm:$0xff] }
  0x2d   :  { %v564_v36 = vld [vmem:[%s1747_s4 + $0x10] sm:$0xff]  ;;  %v565_v37 = vld [vmem:[%s1747_s4 + $0x18] sm:$0xff]  ;;  %v151_v41 = vpack.c.bf16 %v81_v35, %v80_v34  ;;  %v785_v45 = vld [vmem:[%s1748_s5] sm:$0xff]  ;;  %v134_v48 = vpack.c.bf16 %v47_v42, %v46_v39 }
  0x2e   :  { %v64_v43 = vld [vmem:[%s1743_s0 + $0x110] sm:$0xff]  ;;  %v65_v44 = vld [vmem:[%s1743_s0 + $0x118] sm:$0xff]  ;;  %v786_v46 = vld [vmem:[%s1748_s5 + $0x8] sm:$0xff]  ;;  %v223_v47 = vsel %vm212_vm0, %v127_v38, 0 }
  0x2f   :  { %578 = vperm.xlu0 %1114, %v564_v36   ;;  %v30_v49 = vld [vmem:[%s1743_s0] sm:$0xff]  ;;  %v143_v51 = vpack.c.bf16 %v65_v44, %v64_v43  ;;  %v31_v52 = vld [vmem:[%s1743_s0 + $0x8] sm:$0xff]  ;;  %v787_v55 = vld [vmem:[%s1748_s5 + $0x10] sm:$0xff] }
  0x30   :  { %1038 = vmatpush3.bf16.xpose.msra.mxu0 %v226_v29  ;;  %583 = vperm.xlu1 %1115, %v565_v37   ;;  %v78_v53 = vld [vmem:[%s1743_s0 + $0x180] sm:$0xff]  ;;  %v79_v54 = vld [vmem:[%s1743_s0 + $0x188] sm:$0xff]  ;;  %v788_v56 = vld [vmem:[%s1748_s5 + $0x18] sm:$0xff]  ;;  %v126_v57 = vpack.c.bf16 %v31_v52, %v30_v49 }
  0x31   :  { %1093 = vmatprep.subr.msk.bf16.mxu0 %vm212_vm0, %v135_v30  ;;  %v124_v58 = vld [vmem:[%s1743_s0 + $0x2f0] sm:$0xff]  ;;  %v271_v59 = vsel %vm212_vm0, %v143_v51, 0  ;;  %v150_v60 = vpack.c.bf16 %v79_v54, %v78_v53  ;;  %v125_v61 = vld [vmem:[%s1743_s0 + $0x2f8] sm:$0xff]  ;;  %v62_v62 = vld [vmem:[%s1743_s0 + $0x100] sm:$0xff] }
  0x32   :  { %v63_v63 = vld [vmem:[%s1743_s0 + $0x108] sm:$0xff]  ;;  %v789_v0 = vld [vmem:[#allocation2] sm:$0x1]  ;;  %v220_v1 = vsel %vm212_vm0, %v126_v57, 0  ;;  %v173_v2 = vpack.c.bf16 %v125_v61, %v124_v58  ;;  %v108_v4 = vld [vmem:[%s1743_s0 + $0x270] sm:$0xff] }
  0x33   :  { %1058 = vmatpush3.bf16.xpose.msra.mxu1 %v274_v40  ;;  %792 = vperm.xlu0 %1114, %v785_v45   ;;  %v142_v3 = vpack.c.bf16 %v63_v63, %v62_v62  ;;  %v109_v5 = vld [vmem:[%s1743_s0 + $0x278] sm:$0xff]  ;;  %v122_v8 = vld [vmem:[%s1743_s0 + $0x2e0] sm:$0xff]  ;;  %v123_v9 = vld [vmem:[%s1743_s0 + $0x2e8] sm:$0xff] }
  0x34   :  { %1101 = vmatprep.subr.msk.bf16.mxu1 %vm212_vm0, %v151_v41  ;;  %797 = vperm.xlu1 %1115, %v786_v46   ;;  %v165_v6 = vpack.c.bf16 %v109_v5, %v108_v4  ;;  %v1505_v10 = vld [vmem:[%s1744_s1 + $0x8] sm:$0xff]   ;;  %v172_v12 = vpack.c.bf16 %v123_v9, %v122_v8  ;;  %v106_v13 = vld [vmem:[%s1743_s0 + $0x260] sm:$0xff]  ;;  %v120_v16 = vld [vmem:[%s1743_s0 + $0x2d0] sm:$0xff] }
  0x35   :  { %v268_v7 = vsel %vm212_vm0, %v142_v3, 0  ;;  %v107_v14 = vld [vmem:[%s1743_s0 + $0x268] sm:$0xff]  ;;  %v121_v17 = vld [vmem:[%s1743_s0 + $0x2d8] sm:$0xff]  ;;  %v104_v21 = vld [vmem:[%s1743_s0 + $0x250] sm:$0xff] }
  0x36   :  { %v337_v11 = vsel %vm212_vm0, %v165_v6, 0  ;;  %v164_v15 = vpack.c.bf16 %v107_v14, %v106_v13  ;;  %v171_v20 = vpack.c.bf16 %v121_v17, %v120_v16  ;;  %v105_v22 = vld [vmem:[%s1743_s0 + $0x258] sm:$0xff]  ;;  %v118_v24 = vld [vmem:[%s1743_s0 + $0x2c0] sm:$0xff]  ;;  %v119_v25 = vld [vmem:[%s1743_s0 + $0x2c8] sm:$0xff] }
  0x37   :  { %802 = vperm.xlu0 %1114, %v787_v55   ;;  %v163_v23 = vpack.c.bf16 %v105_v22, %v104_v21  ;;  %v170_v27 = vpack.c.bf16 %v119_v25, %v118_v24  ;;  %v102_v28 = vld [vmem:[%s1743_s0 + $0x240] sm:$0xff]  ;;  %v103_v29 = vld [vmem:[%s1743_s0 + $0x248] sm:$0xff]  ;;  %v116_v31 = vld [vmem:[%s1743_s0 + $0x2b0] sm:$0xff] }
  0x38   :  { %1040 = vmatpush3.bf16.xpose.msra.mxu0 %v223_v47  ;;  %807 = vperm.xlu1 %1115, %v788_v56   ;;  %v334_v19 = vsel %vm212_vm0, %v164_v15, 0  ;;  %v162_v30 = vpack.c.bf16 %v103_v29, %v102_v28  ;;  %v117_v32 = vld [vmem:[%s1743_s0 + $0x2b8] sm:$0xff]  ;;  %v100_v35 = vld [vmem:[%s1743_s0 + $0x230] sm:$0xff]  ;;  %v114_v38 = vld [vmem:[%s1743_s0 + $0x2a0] sm:$0xff] }
  0x39   :  { %1094 = vmatprep.subr.msk.bf16.mxu0 %vm212_vm0, %v134_v48  ;;  %v331_v26 = vsel %vm212_vm0, %v163_v23, 0  ;;  %v169_v34 = vpack.c.bf16 %v117_v32, %v116_v31  ;;  %v101_v36 = vld [vmem:[%s1743_s0 + $0x238] sm:$0xff]  ;;  %v115_v39 = vld [vmem:[%s1743_s0 + $0x2a8] sm:$0xff]  ;;  %v98_v42 = vld [vmem:[%s1743_s0 + $0x220] sm:$0xff] }
  0x3a   :  { %v328_v33 = vsel %vm212_vm0, %v162_v30, 0  ;;  %v161_v37 = vpack.c.bf16 %v101_v36, %v100_v35  ;;  %v168_v41 = vpack.c.bf16 %v115_v39, %v114_v38  ;;  %v99_v43 = vld [vmem:[%s1743_s0 + $0x228] sm:$0xff]  ;;  %v112_v45 = vld [vmem:[%s1743_s0 + $0x290] sm:$0xff]  ;;  %v113_v46 = vld [vmem:[%s1743_s0 + $0x298] sm:$0xff] }
  0x3b   :  { %1060 = vmatpush3.bf16.xpose.msra.mxu1 %v271_v59  ;;  %890 = vperm.xlu0 %1114, %v789_v0   ;;  %v160_v44 = vpack.c.bf16 %v99_v43, %v98_v42  ;;  %v167_v48 = vpack.c.bf16 %v113_v46, %v112_v45  ;;  %v96_v49 = vld [vmem:[%s1743_s0 + $0x210] sm:$0xff]  ;;  %v97_v51 = vld [vmem:[%s1743_s0 + $0x218] sm:$0xff]  ;;  %v110_v53 = vld [vmem:[%s1743_s0 + $0x280] sm:$0xff] }
  0x3c   :  { %1102 = vmatprep.subr.msk.bf16.mxu1 %vm212_vm0, %v150_v60  ;;  %v325_v40 = vsel %vm212_vm0, %v161_v37, 0  ;;  %v159_v52 = vpack.c.bf16 %v97_v51, %v96_v49  ;;  %v111_v54 = vld [vmem:[%s1743_s0 + $0x288] sm:$0xff]  ;;  %v94_v57 = vld [vmem:[%s1743_s0 + $0x200] sm:$0xff] }
  0x3d   :  { %v322_v47 = vsel %vm212_vm0, %v160_v44, 0  ;;  %v166_v56 = vpack.c.bf16 %v111_v54, %v110_v53  ;;  %v95_v58 = vld [vmem:[%s1743_s0 + $0x208] sm:$0xff]  ;;  %v1118_v53 = vld [vmem:[%s1746_s3] sm:$0xff]  }
  0x3e   :  { %v319_v55 = vsel %vm212_vm0, %v159_v52, 0  ;;  %v158_v59 = vpack.c.bf16 %v95_v58, %v94_v57 }
  0x40   :  { %1042 = vmatpush3.bf16.xpose.msra.mxu0 %v220_v1  ;;  %v316_v60 = vsel %vm212_vm0, %v158_v59, 0  ;;  %v1119_v59 = vld [vmem:[%s1746_s3 + $0x8] sm:$0xff]   ;;  %s1168_s3 = smov [#allocation3]  }
  0x41   :  { %1103 = vmatprep.subr.msk.bf16.mxu0 %vm212_vm0, %v173_v2  ;;  %s997_s19 = sshll.u32 %s1168_s3, 4  ;;  %s998_s19 = int_to_ptr.vmem [resolvable:$true] %s997_s19 }
  0x42   :  { %s1144_s20 = scalar_lea.vmem %s998_s19, 96  ;;  %p1149_p1 = scmp.lt.s32.totalorder %s998_s19, %s998_s19 }
  0x43   :  { %1062 = vmatpush3.bf16.xpose.msra.mxu1 %v268_v7  ;;  %p1145_p0 = scmp.ne.s32.totalorder %s998_s19, %s1144_s20  ;;  %p1150_p2 = scmp.lt.s32.totalorder %s1144_s20, %s1144_s20 }
  0x45   :  { %p1151_p3 = por %p1150_p2, %p1149_p1 }
  0x47   :  { %1044 = vmatmul.mubr.msk.bf16.vlgmr.msra.gmra.mxu0 %vm212_vm0, %v1318_v50  ;;  %p1152_p4 = pnand %p1151_p3, %p1145_p0 }
  0x48   :  { %1068 = vmatpush3.bf16.xpose.msra.mxu0 %v337_v11  ;;  %1045 = vmatprep.mubr.msk.bf16.mxu0 %vm212_vm0, %v1505_v10 }
  0x49   :  { %1104 = vmatprep.subr.msk.bf16.mxu0 %vm212_vm0, %v172_v12 }
  0x4a   :  { %1064 = vmatmul.mubr.msk.bf16.vlgmr.msra.gmra.mxu1 %vm212_vm0, %v1318_v50 }
  0x4b   :  { %1065 = vmatprep.mubr.msk.bf16.mxu1 %vm212_vm0, %v1505_v10 }
  0x4f   :  { %1046 = vmatmul.mubr.msk.bf16.gmra.mxu0 %vm212_vm0, %v1505_v10 }
  0x50   :  { %1070 = vmatpush3.bf16.xpose.msra.mxu0 %v334_v19  ;;  %1083 = vmatprep.mubr.msk.bf16.mxu0 %vm212_vm0, %v1318_v50 }
  0x51   :  { %1105 = vmatprep.subr.msk.bf16.mxu0 %vm212_vm0, %v171_v20 }
  0x52   :  { %1066 = vmatmul.mubr.msk.bf16.gmra.mxu1 %vm212_vm0, %v1505_v10 }
  0x53   :  { %634 = vmatprep.mubr.bf16.mxu1 %v1166_v18 }
  0x58   :  { %1072 = vmatpush3.bf16.xpose.msra.mxu0 %v331_v26 }
  0x59   :  { %1106 = vmatprep.subr.msk.bf16.mxu0 %vm212_vm0, %v170_v27 }
  0x60   :  { %1074 = vmatpush3.bf16.xpose.msra.mxu0 %v328_v33 }
  0x61   :  { %1107 = vmatprep.subr.msk.bf16.mxu0 %vm212_vm0, %v169_v34 }
  0x68   :  { %1076 = vmatpush3.bf16.xpose.msra.mxu0 %v325_v40 }
  0x69   :  { %1108 = vmatprep.subr.msk.bf16.mxu0 %vm212_vm0, %v168_v41 }
  0x70   :  { %1078 = vmatpush3.bf16.xpose.msra.mxu0 %v322_v47 }
  0x71   :  { %1109 = vmatprep.subr.msk.bf16.mxu0 %vm212_vm0, %v167_v48 }
  0x78   :  { %1080 = vmatpush3.bf16.xpose.msra.mxu0 %v319_v55 }
  0x79   :  { %1110 = vmatprep.subr.msk.bf16.mxu0 %vm212_vm0, %v166_v56 }
  0x80   :  { %1082 = vmatpush3.bf16.xpose.msra.mxu0 %v316_v60 }
  0x87   :  { %1084 = vmatmul.mubr.msk.bf16.vlgmr.msra.gmra.mxu0 %vm212_vm0, %v1318_v50 }
  0x88   :  { %1085 = vmatprep.mubr.msk.bf16.mxu0 %vm212_vm0, %v1505_v10 }
  0x8d   :  { %v1621_v63 = vpop.permute.xlu0 %194 }
  0x8e   :  { %v1623_v2 = vpop.permute.xlu1 %184 }
  0x8f   :  { %1086 = vmatmul.mubr.msk.bf16.gmra.mxu0 %vm212_vm0, %v1505_v10 }
  0x91   :  { %v1625_v7 = vpop.permute.xlu0 %199 }
  0x92   :  { %v1628_v11 = vpop.permute.xlu1 %189 }
 0x107   :  { %v397_v61 = vpop.f32.mrf.mxu0 }
 0x108   :  { %v398_v27 = vadd.f32 %v397_v61, %v1623_v2 }
 0x109   :  { %v399_v62 = vpop.f32.mrf.mxu0 }
 0x10a   :  { %v450_v1 = vpop.f32.mrf.mxu1  ;;  %v400_v14 = vadd.f32 %v399_v62, %v1623_v2  ;;  %v522_v41 = vmax.f32 %v398_v27, 0.0 }
 0x10b   :  { %v401_v0 = vpop.f32.mrf.mxu0  ;;  %v451_v44 = vadd.f32 %v450_v1, %v1623_v2 }
 0x10c   :  { %v452_v4 = vpop.f32.mrf.mxu1  ;;  %v402_v25 = vadd.f32 %v401_v0, %v1628_v11  ;;  %v523_v28 = vmax.f32 %v400_v14, 0.0 }
 0x10d   :  { %v403_v3 = vpop.f32.mrf.mxu0  ;;  %v453_v31 = vadd.f32 %v452_v4, %v1623_v2  ;;  %v524_v54 = vmax.f32 %v451_v44, 0.0 }
 0x10e   :  { %v454_v6 = vpop.f32.mrf.mxu1  ;;  %v404_v15 = vadd.f32 %v403_v3, %v1628_v11  ;;  %v528_v40 = vmax.f32 %v402_v25, 0.0 }
 0x10f   :  { %v407_v5 = vpop.f32.mrf.mxu0  ;;  %v455_v45 = vadd.f32 %v454_v6, %v1628_v11  ;;  %v525_v48 = vmax.f32 %v453_v31, 0.0 }
 0x110   :  { %v456_v8 = vpop.f32.mrf.mxu1  ;;  %v408_v9 = vadd.f32 %v407_v5, %v1621_v63  ;;  %v529_v29 = vmax.f32 %v404_v15, 0.0  ;;  %v546_v52 = vpack.c.bf16 %v528_v40, %v522_v41 }
 0x111   :  { %v409_v50 = vpop.f32.mrf.mxu0  ;;  %v457_v37 = vadd.f32 %v456_v8, %v1628_v11  ;;  %v530_v55 = vmax.f32 %v455_v45, 0.0 }
 0x112   :  { %v410_v10 = vadd.f32 %v409_v50, %v1621_v63  ;;  %v460_v13 = vpop.f32.mrf.mxu1  ;;  %v534_v19 = vmax.f32 %v408_v9, 0.0  ;;  %v547_v42 = vpack.c.bf16 %v529_v29, %v523_v28 }
 0x113   :  { %v411_v12 = vpop.f32.mrf.mxu0  ;;  %v461_v33 = vadd.f32 %v460_v13, %v1621_v63  ;;  %v531_v49 = vmax.f32 %v457_v37, 0.0  ;;  %v548_v58 = vpack.c.bf16 %v530_v55, %v524_v54  ;;  %v1670_v37 = vpop.permute.xlu0 %568 }
 0x114   :  { %v412_v16 = vadd.f32 %v411_v12, %v1625_v7  ;;  %v462_v20 = vpop.f32.mrf.mxu1  ;;  %v535_v21 = vmax.f32 %v410_v10, 0.0 }
 0x115   :  { %v413_v17 = vpop.f32.mrf.mxu0  ;;  %v463_v24 = vadd.f32 %v462_v20, %v1621_v63  ;;  %v536_v46 = vmax.f32 %v461_v33, 0.0  ;;  %v549_v57 = vpack.c.bf16 %v531_v49, %v525_v48 }
 0x116   :  { %v414_v22 = vadd.f32 %v413_v17, %v1625_v7  ;;  %v540_v23 = vmax.f32 %v412_v16, 0.0  ;;  %v464_v26 = vpop.f32.mrf.mxu1 }
 0x117   :  { %v465_v34 = vadd.f32 %v464_v26, %v1625_v7  ;;  %v537_v38 = vmax.f32 %v463_v24, 0.0 }
 0x118   :  { %v541_v30 = vmax.f32 %v414_v22, 0.0  ;;  %v552_v32 = vpack.c.bf16 %v540_v23, %v534_v19  ;;  %v466_v35 = vpop.f32.mrf.mxu1 }
 0x119   :  { %v467_v39 = vadd.f32 %v466_v35, %v1625_v7  ;;  %v542_v47 = vmax.f32 %v465_v34, 0.0 }
 0x11a   :  { %v553_v36 = vpack.c.bf16 %v541_v30, %v535_v21 }
 0x11b   :  { %v543_v43 = vmax.f32 %v467_v39, 0.0  ;;  %v554_v56 = vpack.c.bf16 %v542_v47, %v536_v46  ;;  %v1674_v39 = vpop.permute.xlu0 %578 }
 0x11c   :  { %614 = vmatprep.subr.bf16.mxu1 %v553_v36 }
 0x11d   :  { %615 = vmatpush1.bf16.msra.mxu1 %v552_v32  ;;  %v555_v51 = vpack.c.bf16 %v543_v43, %v537_v38  ;;  %v1672_v38 = vpop.permute.xlu1 %573 }
 0x11e   :  { %616 = vmatprep.subr.bf16.mxu1 %v547_v42 }
 0x11f   :  { %v1683_v48 = vpop.permute.xlu0 %792 }
 0x121   :  { %617 = vmatpush1.bf16.msra.mxu1 %v546_v52  ;;  %v1676_v41 = vpop.permute.xlu1 %583 }
 0x122   :  { %667 = vmatprep.subr.bf16.mxu1 %v555_v51 }
 0x124   :  { %1015 = vmatmul.mubr.msk.bf16.vlgmr.msra.gmra.mxu1 %vm212_vm0, %v1118_v53 }
 0x125   :  { %644 = vmatprep.mubr.bf16.mxu1 %v1166_v18  ;;  %668 = vmatpush1.bf16.msra.mxu1 %v554_v56 }
 0x126   :  { %669 = vmatprep.subr.bf16.mxu1 %v549_v57  ;;  %v1691_v57 = vpop.permute.xlu1 %797 }
 0x129   :  { %670 = vmatpush1.bf16.msra.mxu1 %v548_v58 }
 0x12c   :  { %1016 = vmatmul.mubr.msk.bf16.gmra.mxu1 %vm212_vm0, %v1119_v59 }
 0x12d   :  { %687 = vmatprep.mubr.bf16.mxu1 %v1166_v18 }
 0x134   :  { %1017 = vmatmul.mubr.msk.bf16.vlgmr.msra.gmra.mxu1 %vm212_vm0, %v1118_v53 }
 0x135   :  { %697 = vmatprep.mubr.bf16.mxu1 %v1166_v18 }
 0x13c   :  { %1018 = vmatmul.mubr.msk.bf16.gmra.mxu1 %vm212_vm0, %v1119_v59 }
 0x13d   :  { %740 = vmatprep.mubr.bf16.mxu1 %v1166_v18 }
 0x147   :  { %v503_v60 = vpop.f32.mrf.mxu0 }
 0x148   :  { %v504_v19 = vadd.f32 %v503_v60, %v1623_v2 }
 0x149   :  { %v505_v61 = vpop.f32.mrf.mxu0 }
 0x14a   :  { %v506_v10 = vadd.f32 %v505_v61, %v1623_v2 }
 0x14b   :  { %v507_v62 = vpop.f32.mrf.mxu0 }
 0x14c   :  { %v508_v13 = vadd.f32 %v507_v62, %v1628_v11  ;;  %v527_v21 = vmax.f32 %v506_v10, 0.0 }
 0x14d   :  { %v509_v0 = vpop.f32.mrf.mxu0 }
 0x14e   :  { %v510_v5 = vadd.f32 %v509_v0, %v1628_v11  ;;  %v532_v23 = vmax.f32 %v508_v13, 0.0  ;;  %v1699_v13 = vpop.permute.xlu0 %802 }
 0x14f   :  { %v513_v1 = vpop.f32.mrf.mxu0 }
 0x150   :  { %v514_v8 = vadd.f32 %v513_v1, %v1621_v63  ;;  %v533_v15 = vmax.f32 %v510_v5, 0.0 }
 0x151   :  { %v515_v3 = vpop.f32.mrf.mxu0 }
 0x152   :  { %v516_v6 = vadd.f32 %v515_v3, %v1621_v63  ;;  %v538_v20 = vmax.f32 %v514_v8, 0.0  ;;  %v551_v25 = vpack.c.bf16 %v533_v15, %v527_v21  ;;  %v526_v63 = vmax.f32 %v504_v19, 0.0 }
 0x153   :  { %v517_v4 = vpop.f32.mrf.mxu0 }
 0x154   :  { %v518_v50 = vadd.f32 %v517_v4, %v1625_v7  ;;  %v539_v16 = vmax.f32 %v516_v6, 0.0  ;;  %v550_v26 = vpack.c.bf16 %v532_v23, %v526_v63  ;;  %v1705_v23 = vpop.permute.xlu1 %807 }
 0x155   :  { %v519_v9 = vpop.f32.mrf.mxu0 }
 0x156   :  { %v520_v12 = vadd.f32 %v519_v9, %v1625_v7  ;;  %v544_v14 = vmax.f32 %v518_v50, 0.0 }
 0x158   :  { %v545_v17 = vmax.f32 %v520_v12, 0.0  ;;  %v556_v24 = vpack.c.bf16 %v544_v14, %v538_v20 }
 0x15a   :  { %v557_v22 = vpack.c.bf16 %v545_v17, %v539_v16 }
 0x15c   :  { %720 = vmatprep.subr.bf16.mxu1 %v557_v22 }
 0x15d   :  { %721 = vmatpush1.bf16.msra.mxu1 %v556_v24 }
 0x15e   :  { %722 = vmatprep.subr.bf16.mxu1 %v551_v25 }
 0x161   :  { %723 = vmatpush1.bf16.msra.mxu1 %v550_v26 }
 0x164   :  { %1019 = vmatmul.mubr.msk.bf16.vlgmr.msra.gmra.mxu1 %vm212_vm0, %v1118_v53 }
 0x165   :  { %750 = vmatprep.mubr.bf16.mxu1 %v1166_v18 }
 0x16c   :  { %1020 = vmatmul.mubr.msk.bf16.gmra.mxu1 %vm212_vm0, %v1119_v59 }
 0x1e4   :  { %v636_v7 = vpop.f32.mrf.mxu1 }
 0x1e5   :  { %v637_v58 = vadd.f32 %v636_v7, %v1670_v37 }
 0x1e6   :  { %v638_v2 = vpop.f32.mrf.mxu1 }
 0x1e7   :  { %v639_v49 = vadd.f32 %v638_v2, %v1670_v37  ;;  %v761_v14 = vmax.f32 %v637_v58, 0.0 }
 0x1e8   :  { %v640_v11 = vpop.f32.mrf.mxu1 }
 0x1e9   :  { %v641_v51 = vadd.f32 %v640_v11, %v1672_v38  ;;  %v762_v4 = vmax.f32 %v639_v49, 0.0 }
 0x1ea   :  { %v642_v27 = vpop.f32.mrf.mxu1 }
 0x1eb   :  { %v643_v43 = vadd.f32 %v642_v27, %v1672_v38  ;;  %v767_v5 = vmax.f32 %v641_v51, 0.0  ;;  %v811_v24 = vmul.f32 %v1683_v48, %v762_v4 }
 0x1ec   :  { %v646_v28 = vpop.f32.mrf.mxu1 }
 0x1ed   :  { %v768_v59 = vmax.f32 %v643_v43, 0.0  ;;  %v647_v60 = vadd.f32 %v646_v28, %v1674_v39  ;;  %v816_v25 = vmul.f32 %v1691_v57, %v767_v5  ;;  %v810_v28 = vmul.f32 %v1683_v48, %v761_v14 }
 0x1ee   :  { %v648_v29 = vpop.f32.mrf.mxu1 }
 0x1ef   :  { %v649_v52 = vadd.f32 %v648_v29, %v1674_v39  ;;  %v817_v15 = vmul.f32 %v1691_v57, %v768_v59  ;;  %v773_v16 = vmax.f32 %v647_v60, 0.0  ;;  %v893_v60 = vlaneseq }
 0x1f0   :  { %v650_v30 = vpop.f32.mrf.mxu1 }
 0x1f1   :  { %v774_v6 = vmax.f32 %v649_v52, 0.0  ;;  %v651_v50 = vadd.f32 %v650_v30, %v1676_v41  ;;  %v843_v29 = vadd.f32 %v817_v15, %v811_v24  ;;  %v822_v30 = vmul.f32 %v1699_v13, %v773_v16 }
 0x1f2   :  { %v652_v31 = vpop.f32.mrf.mxu1  ;;  %vm988_vm1 = vcmp.lt.s32.totalorder %v893_v60, 768 }
 0x1f3   :  { %v653_v61 = vadd.f32 %v652_v31, %v1676_v41  ;;  %v823_v63 = vmul.f32 %v1699_v13, %v774_v6  ;;  %v779_v26 = vmax.f32 %v651_v50, 0.0  ;;  %v1721_v50 = vshrl.u32 %v893_v60, 7 }
 0x1f4   :  { %v689_v32 = vpop.f32.mrf.mxu1 }
 0x1f5   :  { %v690_v53 = vadd.f32 %v689_v32, %v1670_v37  ;;  %v780_v17 = vmax.f32 %v653_v61, 0.0  ;;  %v895_v24 = vsub.s32 0, %v1721_v50 }
 0x1f6   :  { %v691_v33 = vpop.f32.mrf.mxu1 }
 0x1f7   :  { %v692_v45 = vadd.f32 %v691_v33, %v1670_v37  ;;  %v763_v8 = vmax.f32 %v690_v53, 0.0  ;;  %v829_v31 = vmul.f32 %v1705_v23, %v780_v17 }
 0x1f8   :  { %v693_v34 = vpop.f32.mrf.mxu1 }
 0x1f9   :  { %v694_v46 = vadd.f32 %v693_v34, %v1672_v38  ;;  %v764_v62 = vmax.f32 %v692_v45, 0.0  ;;  %v812_v7 = vmul.f32 %v1683_v48, %v763_v8 }
 0x1fa   :  { %v695_v35 = vpop.f32.mrf.mxu1 }
 0x1fb   :  { %v696_v42 = vadd.f32 %v695_v35, %v1672_v38  ;;  %v769_v0 = vmax.f32 %v694_v46, 0.0  ;;  %v813_v19 = vmul.f32 %v1683_v48, %v764_v62  ;;  %v834_v35 = vadd.f32 %v816_v25, %v810_v28 }
 0x1fc   :  { %v699_v36 = vpop.f32.mrf.mxu1 }
 0x1fd   :  { %v770_v54 = vmax.f32 %v696_v42, 0.0  ;;  %v700_v55 = vadd.f32 %v699_v36, %v1674_v39  ;;  %v818_v20 = vmul.f32 %v1691_v57, %v769_v0  ;;  %v844_v36 = vadd.f32 %v843_v29, %v823_v63 }
 0x1fe   :  { %v701_v18 = vpop.f32.mrf.mxu1  ;;  %v835_v43 = vadd.f32 %v834_v35, %v822_v30 }
 0x1ff   :  { %v702_v47 = vadd.f32 %v701_v18, %v1674_v39  ;;  %v819_v9 = vmul.f32 %v1691_v57, %v770_v54  ;;  %v775_v10 = vmax.f32 %v700_v55, 0.0  ;;  %v852_v32 = vadd.f32 %v818_v20, %v812_v7 }
 0x200   :  { %v703_v40 = vpop.f32.mrf.mxu1  ;;  %v828_v18 = vmul.f32 %v1705_v23, %v779_v26 }
 0x201   :  { %v776_v1 = vmax.f32 %v702_v47, 0.0  ;;  %v704_v3 = vadd.f32 %v703_v40, %v1676_v41  ;;  %v861_v2 = vadd.f32 %v819_v9, %v813_v19  ;;  %v824_v11 = vmul.f32 %v1699_v13, %v775_v10 }
 0x202   :  { %v705_v44 = vpop.f32.mrf.mxu1  ;;  %v836_v46 = vadd.f32 %v835_v43, %v828_v18 }
 0x203   :  { %v706_v56 = vadd.f32 %v705_v44, %v1676_v41  ;;  %v825_v21 = vmul.f32 %v1699_v13, %v776_v1  ;;  %v781_v22 = vmax.f32 %v704_v3, 0.0  ;;  %v853_v40 = vadd.f32 %v852_v32, %v824_v11 }
 0x204   :  { %v845_v44 = vadd.f32 %v844_v36, %v829_v31  ;;  %v837_v52 = vrot.slane %v836_v46, 4 }
 0x205   :  { %v782_v12 = vmax.f32 %v706_v56, 0.0  ;;  %v862_v33 = vadd.f32 %v861_v2, %v825_v21  ;;  %v830_v34 = vmul.f32 %v1705_v23, %v781_v22  ;;  %v891_v2 = vpop.permute.xlu0 %890 }
 0x206   :  { %v846_v49 = vrot.slane %v845_v44, 4  ;;  %v838_v56 = vadd.f32 %v837_v52, %v836_v46  ;;  %v896_v35 = vrot.slane %v891_v2, %v895_v24 }
 0x207   :  { %v831_v27 = vmul.f32 %v1705_v23, %v782_v12  ;;  %v854_v45 = vadd.f32 %v853_v40, %v830_v34 }
 0x208   :  { %v847_v54 = vadd.f32 %v846_v49, %v845_v44  ;;  %v839_v1 = vrot.slane %v838_v56, 2 }
 0x209   :  { %v863_v42 = vadd.f32 %v862_v33, %v831_v27  ;;  %v855_v51 = vrot.slane %v854_v45, 4 }
 0x20a   :  { %v848_v61 = vrot.slane %v847_v54, 2  ;;  %v840_v16 = vadd.f32 %v839_v1, %v838_v56 }
 0x20b   :  { %v864_v47 = vrot.slane %v863_v42, 4  ;;  %v856_v55 = vadd.f32 %v855_v51, %v854_v45 }
 0x20c   :  { %v849_v8 = vadd.f32 %v848_v61, %v847_v54 }
 0x20d   :  { %v865_v53 = vadd.f32 %v864_v47, %v863_v42  ;;  %v857_v62 = vrot.slane %v856_v55, 2 }
 0x20e   :  { %v850_v25 = vrot.slane %v849_v8, 1 }
 0x20f   :  { %v866_v58 = vrot.slane %v865_v53, 2  ;;  %v858_v9 = vadd.f32 %v857_v62, %v856_v55 }
 0x210   :  { %v851_v36 = vadd.f32 %v850_v25, %v849_v8 }
 0x211   :  { %v867_v3 = vadd.f32 %v866_v58, %v865_v53  ;;  %v859_v63 = vrot.slane %v858_v9, 1 }
 0x212   :  { %v898_v53 = vadd.f32 %v896_v35, %v851_v36 }
 0x213   :  { %v868_v17 = vrot.slane %v867_v3, 1  ;;  %v860_v18 = vadd.f32 %v859_v63, %v858_v9 }
 0x214   :  { %v1022_v62 = vmul.f32 -1.442695, %v898_v53 }
 0x215   :  { %v869_v28 = vadd.f32 %v868_v17, %v867_v3  ;;  %v899_v54 = vadd.f32 %v896_v35, %v860_v18 }
 0x217   :  { %v900_v47 = vadd.f32 %v896_v35, %v869_v28 }
 0x224   :  { %v742_v59 = vpop.f32.mrf.mxu1 }
 0x225   :  { %v743_v4 = vadd.f32 %v742_v59, %v1670_v37  ;;  %v1024_v59 = vmul.f32 -1.442695, %v900_v47 }
 0x226   :  { %v744_v0 = vpop.f32.mrf.mxu1 }
 0x227   :  { %v745_v10 = vadd.f32 %v744_v0, %v1670_v37  ;;  %v765_v19 = vmax.f32 %v743_v4, 0.0  ;;  %v1023_v0 = vmul.f32 -1.442695, %v899_v54  ;;  %1120 = vpow2.f32 %v1024_v59 }
 0x228   :  { %v746_v5 = vpop.f32.mrf.mxu1  ;;  %1122 = vpow2.f32 %v1022_v62 }
 0x229   :  { %v747_v6 = vadd.f32 %v746_v5, %v1672_v38  ;;  %v766_v26 = vmax.f32 %v745_v10, 0.0  ;;  %v814_v29 = vmul.f32 %v1683_v48, %v765_v19  ;;  %1124 = vpow2.f32 %v1023_v0 }
 0x22a   :  { %v748_v12 = vpop.f32.mrf.mxu1 }
 0x22b   :  { %v771_v14 = vmax.f32 %v747_v6, 0.0  ;;  %v749_v15 = vadd.f32 %v748_v12, %v1672_v38  ;;  %v841_v38 = vrot.slane %v840_v16, 1  ;;  %v815_v40 = vmul.f32 %v1683_v48, %v766_v26 }
 0x22c   :  { %v752_v20 = vpop.f32.mrf.mxu1 }
 0x22d   :  { %v772_v21 = vmax.f32 %v749_v15, 0.0  ;;  %v753_v22 = vadd.f32 %v752_v20, %v1674_v39  ;;  %v820_v37 = vmul.f32 %v1691_v57, %v771_v14  ;;  %v842_v46 = vadd.f32 %v841_v38, %v840_v16 }
 0x22e   :  { %v754_v7 = vpop.f32.mrf.mxu1  ;;  %v1167_v38 = vmov 1966171168  }
 0x22f   :  { %v777_v11 = vmax.f32 %v753_v22, 0.0  ;;  %v755_v27 = vadd.f32 %v754_v7, %v1674_v39  ;;  %v821_v31 = vmul.f32 %v1691_v57, %v772_v21  ;;  %v870_v43 = vadd.f32 %v820_v37, %v814_v29 }
 0x230   :  { %v756_v30 = vpop.f32.mrf.mxu1  ;;  %v897_v58 = vadd.f32 %v896_v35, %v842_v46  ;;  %v949_v28 = vunpack.c.l.s4 %v1167_v38 }
 0x231   :  { %v826_v32 = vmul.f32 %v1699_v13, %v777_v11  ;;  %v778_v33 = vmax.f32 %v755_v27, 0.0  ;;  %v757_v34 = vadd.f32 %v756_v30, %v1676_v41  ;;  %v879_v57 = vadd.f32 %v821_v31, %v815_v40 }
 0x232   :  { %v758_v42 = vpop.f32.mrf.mxu1  ;;  %v1021_v3 = vmul.f32 -1.442695, %v897_v58  ;;  %v950_v31 = vunpack.c.0.s8 %v949_v28 }
 0x233   :  { %v827_v39 = vmul.f32 %v1699_v13, %v778_v33  ;;  %v783_v44 = vmax.f32 %v757_v34, 0.0  ;;  %v759_v45 = vadd.f32 %v758_v42, %v1676_v41  ;;  %v871_v49 = vadd.f32 %v870_v43, %v826_v32 }
 0x234   :  { %1126 = vpow2.f32 %v1021_v3  ;;  %v1121_v20 = vpop.eup %1120 }
 0x235   :  { %v832_v51 = vmul.f32 %v1705_v23, %v783_v44  ;;  %v784_v52 = vmax.f32 %v759_v45, 0.0  ;;  %v880_v55 = vadd.f32 %v879_v57, %v827_v39  ;;  %v1123_v21 = vpop.eup %1122  ;;  %v924_v24 = vadd.f32 1.0, %v1121_v20 }
 0x236   :  { %v1125_v22 = vpop.eup %1124  ;;  %v922_v63 = vadd.f32 1.0, %v1123_v21 }
 0x237   :  { %v872_v56 = vadd.f32 %v871_v49, %v832_v51  ;;  %v833_v48 = vmul.f32 %v1705_v23, %v784_v52  ;;  %v923_v26 = vadd.f32 1.0, %v1125_v22 }
 0x239   :  { %v873_v61 = vrot.slane %v872_v56, 4  ;;  %v881_v13 = vadd.f32 %v880_v55, %v833_v48 }
 0x23b   :  { %v874_v41 = vadd.f32 %v873_v61, %v872_v56  ;;  %v882_v1 = vrot.slane %v881_v13, 4 }
 0x23d   :  { %v875_v4 = vrot.slane %v874_v41, 2  ;;  %v883_v5 = vadd.f32 %v882_v1, %v881_v13 }
 0x23f   :  { %v876_v6 = vadd.f32 %v875_v4, %v874_v41  ;;  %v884_v8 = vrot.slane %v883_v5, 2 }
 0x241   :  { %v877_v9 = vrot.slane %v876_v6, 1  ;;  %v885_v10 = vadd.f32 %v884_v8, %v883_v5  ;;  %v1127_v25 = vpop.eup %1126 }
 0x242   :  { %v921_v7 = vadd.f32 1.0, %v1127_v25 }
 0x243   :  { %v878_v23 = vadd.f32 %v877_v9, %v876_v6  ;;  %v886_v12 = vrot.slane %v885_v10, 1 }
 0x245   :  { %v901_v14 = vadd.f32 %v896_v35, %v878_v23  ;;  %v887_v15 = vadd.f32 %v886_v12, %v885_v10 }
 0x247   :  { %v1025_v16 = vmul.f32 -1.442695, %v901_v14  ;;  %v902_v17 = vadd.f32 %v896_v35, %v887_v15  ;;  %v953_v35 = vsub.s32 %v950_v31, %v1721_v50 }
 0x249   :  { %1128 = vpow2.f32 %v1025_v16  ;;  %v1026_v19 = vmul.f32 -1.442695, %v902_v17 }
 0x24b   :  { %1130 = vpow2.f32 %v1026_v19 }
 0x24c   :  { %1132 = vrcp.f32 %v924_v24 }
 0x24d   :  { %1134 = vrcp.f32 %v922_v63 }
 0x24e   :  { %1136 = vrcp.f32 %v923_v26 }
 0x24f   :  { %1138 = vrcp.f32 %v921_v7 }
 0x256   :  { %v1129_v2 = vpop.eup %1128 }
 0x257   :  { %v925_v37 = vadd.f32 1.0, %v1129_v2 }
 0x258   :  { %v1131_v11 = vpop.eup %1130 }
 0x259   :  { %v926_v27 = vadd.f32 1.0, %v1131_v11  ;;  %1140 = vrcp.f32 %v925_v37  ;;  %v1133_v29 = vpop.eup %1132 }
 0x25a   :  { %v1135_v30 = vpop.eup %1134 }
 0x25b   :  { %1142 = vrcp.f32 %v926_v27  ;;  %v1137_v32 = vpop.eup %1136 }
 0x25c   :  { %v946_v33 = vcombine.low %v1137_v32, %v1133_v29  ;;  %v1139_v34 = vpop.eup %1138 }
 0x25d   :  { %v945_v36 = vcombine.low %v1139_v34, %v1135_v30 }
 0x25e   :  { %v961_v18 = vrot.slane %v946_v33, %v953_v35 }
 0x25f   :  { %v954_v42 = vrot.slane %v945_v36, %v953_v35 }
 0x261   :  { %v969_v44 = vcombine.low %v954_v42, %v961_v18 }
 0x263   :  { %v976_v46 = vrot.slane %v969_v44, %v953_v35 }
 0x266   :  { %v1141_v40 = vpop.eup %1140 }
 0x268   :  { %v1143_v43 = vpop.eup %1142 }
 0x269   :  { %v947_v39 = vcombine.low %v1141_v40, %v1143_v43 }
 0x26b   :  { %v968_v45 = vrot.slane %v947_v39, %v953_v35 }
 0x26d   :  { %v983_v47 = vrot.slane %v968_v45, %v953_v35 }
 0x26f   :  { %v984_v57 = vcombine.low %v976_v46, %v983_v47 }
 0x271   :  { %990 = vst.msk [vmem:[#allocation3] sm:$0x3f] %vm988_vm1, %v984_v57 }
 0x272   :  { %1155 = shalt.err (!%p1152_p4)
}
 0x273   :  { %1000 = dma.vmem_to_hbm [thread:$0]  %s998_s19, 96, %s1750_s7, [#allocation4]  }
 0x274   :  { %1164 = dma.done.wait [#allocation4], 96  }
 0x275   :  { %1165 = vsyncadd [#allocation4], 4294967200 }
 0x276   :  { %1004 = vsyncpa [#allocation4], 1 }

</bundles_post_ra>
